<compile_context>
chip_gen: v5e
topology: v5e:2x2
jax: 0.10.0
libtpu: 0.0.40
codegen_flags: <defaults>
</compile_context>

<pallas_src>
import functools

import jax
import jax.numpy as jnp
from jax.experimental import pallas as pl
from jax.experimental.pallas import tpu as pltpu

LANES = 128
SUBLANES = 8


def _loss_sums_kernel(x_ref, t_ref, acc_ref, *, pos_weight, tile_rows,
                      steps_per_core, full_blocks, rows_in_last):
    """Accumulates [sum(sig*t), sum(sig), sum(t), sum(bce)] as (8,128) vectors.

    acc_ref is a resident (4*8, 128) f32 VMEM accumulator; row-groups of 8
    sublanes hold the four partial sums.  All per-step reductions are pure
    VALU vreg adds; nothing is collapsed to a scalar inside the kernel.
    """
    p = pl.program_id(0)
    j = pl.program_id(1)

    @pl.when(j == 0)
    def _():
        acc_ref[...] = jnp.zeros_like(acc_ref)

    block_idx = p * steps_per_core + j

    def accumulate(x, t):
        # Shared transcendentals: one exp(-|x|) + one log1p feed softplus; the
        # sigmoid divide is replaced by an EUP exp: sigmoid(x)=exp(x-softplus(x)).
        e = jnp.exp(-jnp.abs(x))
        sp_pos = jnp.maximum(x, 0.0) + jnp.log1p(e)          # softplus(x)
        sig = jnp.exp(x - sp_pos)                            # sigmoid(x)
        if pos_weight == 1.0:
            # BCEWithLogits specializes to softplus(x) - t*x when pos_weight==1.
            bce = sp_pos - t * x
        else:
            # w*t*softplus(-x) + (1-t)*softplus(x); softplus(-x)=softplus(x)-x.
            bce = pos_weight * t * (sp_pos - x) + (1.0 - t) * sp_pos

        def fold(v):
            # (tile_rows,128) -> (8,128): layout-preserving fold, pure VALU adds.
            return jnp.sum(v.reshape(tile_rows // SUBLANES, SUBLANES, LANES),
                           axis=0)

        acc_ref[0 * SUBLANES:1 * SUBLANES, :] += fold(sig * t)
        acc_ref[1 * SUBLANES:2 * SUBLANES, :] += fold(sig)
        acc_ref[2 * SUBLANES:3 * SUBLANES, :] += fold(t)
        acc_ref[3 * SUBLANES:4 * SUBLANES, :] += fold(bce)

    # Steady state: fully-valid tiles run with no masking work at all.
    if full_blocks > 0:
        @pl.when(block_idx < full_blocks)
        def _():
            accumulate(x_ref[...].astype(jnp.float32),
                       t_ref[...].astype(jnp.float32))

    # At most one partial tile per call (trace-time static branch).  Clamped /
    # duplicated out-of-range tiles match neither branch and do no compute.
    if rows_in_last > 0:
        @pl.when(block_idx == full_blocks)
        def _():
            x = x_ref[...].astype(jnp.float32)
            t = t_ref[...].astype(jnp.float32)
            row = jax.lax.broadcasted_iota(jnp.int32, (tile_rows, LANES), 0)
            valid = row < rows_in_last
            # Clamp garbage tile padding via select (never multiply-mask) so
            # NaN/Inf cannot leak through exp/log1p; x=-100 -> sig/bce ~= 0.
            x = jnp.where(valid, x, -100.0)
            t = jnp.where(valid, t, 0.0)
            accumulate(x, t)


def main_loss_dice_bce(inputs, target, smooth=1.0, loss_weight=1.0,
                       tile_rows=2048):
    """Pallas implementation of MainLoss(loss_type='Dice_BCE').forward."""
    n = int(inputs.size)

    x_flat = inputs.reshape(-1)          # keep native dtype; kernel upcasts
    t_flat = target.reshape(-1)

    rows = n // LANES
    n_prefix = rows * LANES
    rem = n - n_prefix

    # Ragged tail (< 128 elements): tiny plain-JAX contribution, so we never
    # pay a full-array concatenate/pad pass through HBM.
    if rem:
        xt = x_flat[n_prefix:].astype(jnp.float32)
        tt = t_flat[n_prefix:].astype(jnp.float32)
        sp = jax.nn.softplus(xt)
        st = jax.nn.sigmoid(xt)
        if loss_weight == 1.0:
            bce_t = sp - tt * xt
        else:
            bce_t = loss_weight * tt * (sp - xt) + (1.0 - tt) * sp
        tail = jnp.stack([jnp.sum(st * tt), jnp.sum(st), jnp.sum(tt),
                          jnp.sum(bce_t)])
    else:
        tail = jnp.zeros((4,), jnp.float32)

    if rows == 0:
        sums = tail
    else:
        # 128-aligned prefix; for the common case n % 128 == 0 the slice and
        # reshape are free (identity) views.
        x2d = x_flat[:n_prefix].reshape(rows, LANES)
        t2d = t_flat[:n_prefix].reshape(rows, LANES)

        # Large sublane-aligned row tiles: default 2048 rows == 1 MiB f32 per
        # input per pipeline buffer (2 inputs x 2 buffers ~= 4 MiB VMEM, safe
        # on every generation including v7x's 64 MiB VMEM).
        tr = min(int(tile_rows), rows)
        tr = max(SUBLANES, -(-tr // SUBLANES) * SUBLANES)

        total_steps = pl.cdiv(rows, tr)
        full_blocks = rows // tr                 # tiles with no padding at all
        rows_in_last = rows - full_blocks * tr   # valid rows in the partial tile

        # 2-way "parallel" leading axis feeds both TensorCores on v7x; it is a
        # plain sequential loop on single-core chips.  Clamped duplicate tiles
        # (odd step counts) skip all compute inside the kernel.
        num_parallel = 2 if total_steps >= 8 else 1
        steps_per_core = -(-total_steps // num_parallel)
        last_block = total_steps - 1

        if num_parallel * steps_per_core == total_steps:
            def in_map(p, j):
                return (p * steps_per_core + j, 0)
        else:
            # Clamp out-of-range tiles onto the last real block; the kernel
            # skips them (they match neither pl.when branch).
            def in_map(p, j):
                return (jnp.minimum(p * steps_per_core + j, last_block), 0)

        kernel = functools.partial(
            _loss_sums_kernel,
            pos_weight=float(loss_weight),
            tile_rows=tr,
            steps_per_core=steps_per_core,
            full_blocks=full_blocks,
            rows_in_last=rows_in_last,
        )

        partials = pl.pallas_call(
            kernel,
            out_shape=jax.ShapeDtypeStruct(
                (num_parallel * 4 * SUBLANES, LANES), jnp.float32),
            grid_spec=pltpu.PrefetchScalarGridSpec(
                num_scalar_prefetch=0,
                grid=(num_parallel, steps_per_core),
                in_specs=[
                    pl.BlockSpec((tr, LANES), in_map),
                    pl.BlockSpec((tr, LANES), in_map),
                ],
                out_specs=pl.BlockSpec((4 * SUBLANES, LANES),
                                       lambda p, j: (p, 0)),
            ),
            compiler_params=pltpu.CompilerParams(
                dimension_semantics=("parallel", "arbitrary"),
                vmem_limit_bytes=32 * 1024 * 1024,
            ),
        )(x2d, t2d)

        # Single final cross-lane reduction, done once in JAX glue.
        sums = jnp.sum(partials.reshape(num_parallel, 4, SUBLANES, LANES),
                       axis=(0, 2, 3)) + tail

    intersection, sig_sum, tgt_sum, bce_sum = sums[0], sums[1], sums[2], sums[3]
    dice = (2.0 * intersection + smooth) / (sig_sum + tgt_sum + smooth)
    return (1.0 - dice) + bce_sum / jnp.float32(n)


def _reference(inputs, target, smooth=1.0, loss_weight=1.0):
    """Pure-JAX reference mirroring the PyTorch forward."""
    x = inputs.reshape(-1).astype(jnp.float32)
    t = target.reshape(-1).astype(jnp.float32)
    s = jax.nn.sigmoid(x)
    inter = jnp.sum(s * t)
    dice = (2.0 * inter + smooth) / (jnp.sum(s) + jnp.sum(t) + smooth)
    bce = jnp.mean(loss_weight * t * jax.nn.softplus(-x)
                   + (1.0 - t) * jax.nn.softplus(x))
    return (1.0 - dice) + bce


if __name__ == "__main__":
    key = jax.random.PRNGKey(0)
    k1, k2, k3, k4, k5, k6, k7, k8 = jax.random.split(key, 8)

    # NCHW: batch=2, channels=4, spatial=16x16 (n % 128 == 0: aligned fast path)
    x = jax.random.normal(k1, (2, 4, 16, 16), dtype=jnp.float32)
    t = (jax.random.uniform(k2, (2, 4, 16, 16)) > 0.5).astype(jnp.float32)
    loss = jax.block_until_ready(
        main_loss_dice_bce(x, t, smooth=1.0, loss_weight=1.0))
    ref = _reference(x, t, smooth=1.0, loss_weight=1.0)
    assert jnp.allclose(loss, ref, rtol=1e-5, atol=1e-5), (loss, ref)

    # Ragged shape: exercises the 128-aligned prefix + plain-JAX tail split
    # and the in-kernel partial (masked) tile.
    x2 = jax.random.normal(k3, (2, 3, 15, 17), dtype=jnp.float32)
    t2 = (jax.random.uniform(k4, (2, 3, 15, 17)) > 0.5).astype(jnp.float32)
    loss2 = jax.block_until_ready(main_loss_dice_bce(x2, t2))
    ref2 = _reference(x2, t2)
    assert jnp.allclose(loss2, ref2, rtol=1e-5, atol=1e-5), (loss2, ref2)

    # Multi-tile path with a partial final tile + ragged tail (small tiles).
    x3 = jax.random.normal(k5, (2, 4, 33, 20), dtype=jnp.float32)
    t3 = (jax.random.uniform(k6, (2, 4, 33, 20)) > 0.5).astype(jnp.float32)
    loss3 = jax.block_until_ready(main_loss_dice_bce(x3, t3, tile_rows=8))
    ref3 = _reference(x3, t3)
    assert jnp.allclose(loss3, ref3, rtol=1e-5, atol=1e-5), (loss3, ref3)

    # 2-way parallel split with an odd step count (exercises the clamped,
    # compute-skipped duplicate tile), plus non-default pos_weight path.
    x4 = jax.random.normal(k7, (2, 4, 32, 36), dtype=jnp.float32)
    t4 = (jax.random.uniform(k8, (2, 4, 32, 36)) > 0.5).astype(jnp.float32)
    loss4 = jax.block_until_ready(main_loss_dice_bce(x4, t4, tile_rows=8))
    ref4 = _reference(x4, t4)
    assert jnp.allclose(loss4, ref4, rtol=1e-5, atol=1e-5), (loss4, ref4)

    loss5 = jax.block_until_ready(main_loss_dice_bce(x, t, loss_weight=2.0))
    ref5 = _reference(x, t, loss_weight=2.0)
    assert jnp.allclose(loss5, ref5, rtol=1e-5, atol=1e-5), (loss5, ref5)

    # TODO(synk): only the default 'Dice_BCE' branch of MainLoss is implemented.
    print("KERNEL_OK")
</pallas_src>

<mosaic_0001>
module attributes {stable_mosaic.version = 11 : i64} {
  func.func @_loss_sums_kernel(%arg0: i32, %arg1: i32, %arg2: memref<16x128xf32, #tpu.memory_space<vmem>>, %arg3: memref<16x128xf32, #tpu.memory_space<vmem>>, %arg4: memref<32x128xf32, #tpu.memory_space<vmem>>) attributes {dimension_semantics = [#tpu.dimension_semantics<parallel>, #tpu.dimension_semantics<arbitrary>], iteration_bounds = array<i64: 1, 1>, scalar_prefetch = 0 : i64, scratch_operands = 0 : i64, tpu.core_type = #tpu.core_type<tc>, window_params = [{transform_indices = @transform_0, window_bounds = array<i64: 16, 128>}, {transform_indices = @transform_1, window_bounds = array<i64: 16, 128>}, {transform_indices = @transform_2, window_bounds = array<i64: 32, 128>}]} {
    %c0_i32 = arith.constant 0 : i32
    %0 = arith.cmpi eq, %arg1, %c0_i32 : i32
    %1 = arith.extui %0 : i1 to i32
    %c0_i32_0 = arith.constant 0 : i32
    %2 = arith.cmpi ne, %1, %c0_i32_0 : i32
    scf.if %2 {
      %cst = arith.constant 0.000000e+00 : f32
      %8 = vector.broadcast %cst : f32 to vector<32x128xf32>
      %c0 = arith.constant 0 : index
      %c0_3 = arith.constant 0 : index
      %9 = vector.load %arg4[%c0, %c0_3] : memref<32x128xf32, #tpu.memory_space<vmem>>, vector<32x128xf32>
      tpu.vector_store %arg4[%c0, %c0_3], %8 {strides = array<i32>} : memref<32x128xf32, #tpu.memory_space<vmem>>, vector<32x128xf32>,
    } else {
    }
    %c1_i32 = arith.constant 1 : i32
    %3 = arith.muli %arg0, %c1_i32 : i32
    %4 = arith.addi %3, %arg1 : i32
    %c1_i32_1 = arith.constant 1 : i32
    %5 = arith.cmpi slt, %4, %c1_i32_1 : i32
    %6 = arith.extui %5 : i1 to i32
    %c0_i32_2 = arith.constant 0 : i32
    %7 = arith.cmpi ne, %6, %c0_i32_2 : i32
    scf.if %7 {
      %c0 = arith.constant 0 : index
      %c0_3 = arith.constant 0 : index
      %8 = vector.load %arg2[%c0, %c0_3] : memref<16x128xf32, #tpu.memory_space<vmem>>, vector<16x128xf32>
      %c0_4 = arith.constant 0 : index
      %c0_5 = arith.constant 0 : index
      %9 = vector.load %arg3[%c0_4, %c0_5] : memref<16x128xf32, #tpu.memory_space<vmem>>, vector<16x128xf32>
      %10 = math.absf %8 : vector<16x128xf32>
      %cst = arith.constant 0.000000e+00 : f32
      %11 = vector.broadcast %cst : f32 to vector<16x128xf32>
      %12 = arith.subf %11, %10 : vector<16x128xf32>
      %13 = math.exp %12 : vector<16x128xf32>
      %cst_6 = arith.constant 0.000000e+00 : f32
      %14 = vector.broadcast %cst_6 : f32 to vector<16x128xf32>
      %15 = arith.maximumf %8, %14 : vector<16x128xf32>
      %16 = math.log1p %13 : vector<16x128xf32>
      %17 = arith.addf %15, %16 : vector<16x128xf32>
      %18 = arith.subf %8, %17 : vector<16x128xf32>
      %19 = math.exp %18 : vector<16x128xf32>
      %20 = arith.mulf %9, %8 : vector<16x128xf32>
      %21 = arith.subf %17, %20 : vector<16x128xf32>
      %c0_7 = arith.constant 0 : index
      %c0_8 = arith.constant 0 : index
      %22 = vector.load %arg4[%c0_7, %c0_8] : memref<32x128xf32, #tpu.memory_space<vmem>>, vector<8x128xf32>
      %23 = arith.mulf %19, %9 : vector<16x128xf32>
      %24 = vector.shape_cast %23 : vector<16x128xf32> to vector<2x8x128xf32>
      %cst_9 = arith.constant dense<0.000000e+00> : vector<8x128xf32>
      %25 = vector.multi_reduction <add>, %24, %cst_9 [0] : vector<2x8x128xf32> to vector<8x128xf32>
      %26 = arith.addf %22, %25 : vector<8x128xf32>
      %c0_10 = arith.constant 0 : index
      %c0_11 = arith.constant 0 : index
      %27 = vector.load %arg4[%c0_10, %c0_11] : memref<32x128xf32, #tpu.memory_space<vmem>>, vector<8x128xf32>
      tpu.vector_store %arg4[%c0_10, %c0_11], %26 {strides = array<i32>} : memref<32x128xf32, #tpu.memory_space<vmem>>, vector<8x128xf32>,
      %c8 = arith.constant 8 : index
      %c0_12 = arith.constant 0 : index
      %28 = vector.load %arg4[%c8, %c0_12] : memref<32x128xf32, #tpu.memory_space<vmem>>, vector<8x128xf32>
      %29 = vector.shape_cast %19 : vector<16x128xf32> to vector<2x8x128xf32>
      %cst_13 = arith.constant dense<0.000000e+00> : vector<8x128xf32>
      %30 = vector.multi_reduction <add>, %29, %cst_13 [0] : vector<2x8x128xf32> to vector<8x128xf32>
      %31 = arith.addf %28, %30 : vector<8x128xf32>
      %c8_14 = arith.constant 8 : index
      %c0_15 = arith.constant 0 : index
      %32 = vector.load %arg4[%c8_14, %c0_15] : memref<32x128xf32, #tpu.memory_space<vmem>>, vector<8x128xf32>
      tpu.vector_store %arg4[%c8_14, %c0_15], %31 {strides = array<i32>} : memref<32x128xf32, #tpu.memory_space<vmem>>, vector<8x128xf32>,
      %c16 = arith.constant 16 : index
      %c0_16 = arith.constant 0 : index
      %33 = vector.load %arg4[%c16, %c0_16] : memref<32x128xf32, #tpu.memory_space<vmem>>, vector<8x128xf32>
      %34 = vector.shape_cast %9 : vector<16x128xf32> to vector<2x8x128xf32>
      %cst_17 = arith.constant dense<0.000000e+00> : vector<8x128xf32>
      %35 = vector.multi_reduction <add>, %34, %cst_17 [0] : vector<2x8x128xf32> to vector<8x128xf32>
      %36 = arith.addf %33, %35 : vector<8x128xf32>
      %c16_18 = arith.constant 16 : index
      %c0_19 = arith.constant 0 : index
      %37 = vector.load %arg4[%c16_18, %c0_19] : memref<32x128xf32, #tpu.memory_space<vmem>>, vector<8x128xf32>
      tpu.vector_store %arg4[%c16_18, %c0_19], %36 {strides = array<i32>} : memref<32x128xf32, #tpu.memory_space<vmem>>, vector<8x128xf32>,
      %c24 = arith.constant 24 : index
      %c0_20 = arith.constant 0 : index
      %38 = vector.load %arg4[%c24, %c0_20] : memref<32x128xf32, #tpu.memory_space<vmem>>, vector<8x128xf32>
      %39 = vector.shape_cast %21 : vector<16x128xf32> to vector<2x8x128xf32>
      %cst_21 = arith.constant dense<0.000000e+00> : vector<8x128xf32>
      %40 = vector.multi_reduction <add>, %39, %cst_21 [0] : vector<2x8x128xf32> to vector<8x128xf32>
      %41 = arith.addf %38, %40 : vector<8x128xf32>
      %c24_22 = arith.constant 24 : index
      %c0_23 = arith.constant 0 : index
      %42 = vector.load %arg4[%c24_22, %c0_23] : memref<32x128xf32, #tpu.memory_space<vmem>>, vector<8x128xf32>
      tpu.vector_store %arg4[%c24_22, %c0_23], %41 {strides = array<i32>} : memref<32x128xf32, #tpu.memory_space<vmem>>, vector<8x128xf32>,
    } else {
    }
    return
  }
  func.func @transform_0(%arg0: i32, %arg1: i32) -> (i32, i32) {
    %c1_i32 = arith.constant 1 : i32
    %0 = arith.muli %arg0, %c1_i32 : i32
    %1 = arith.addi %0, %arg1 : i32
    %c0_i32 = arith.constant 0 : i32
    %c0_i32_0 = arith.constant 0 : i32
    return %1, %c0_i32 : i32, i32
  }
  func.func @transform_1(%arg0: i32, %arg1: i32) -> (i32, i32) {
    %c1_i32 = arith.constant 1 : i32
    %0 = arith.muli %arg0, %c1_i32 : i32
    %1 = arith.addi %0, %arg1 : i32
    %c0_i32 = arith.constant 0 : i32
    %c0_i32_0 = arith.constant 0 : i32
    return %1, %c0_i32 : i32, i32
  }
  func.func @transform_2(%arg0: i32, %arg1: i32) -> (i32, i32) {
    %c0_i32 = arith.constant 0 : i32
    %c0_i32_0 = arith.constant 0 : i32
    return %arg0, %c0_i32 : i32, i32
  }
}

</mosaic_0001>

<bundles_post_ra>
// kernel: tpu_custom_call.1
= control target key start
LH: loop header
LB: loop body
LE: loop exit
PB: predicated region body
PF: predicated region fallthrough
CT: control target
= control target key end

     0   :  { %7 = vsyncpa [#allocation3], 0  ;;  %s285_s0 = inlined_call_operand.hbm [shape: f32[16,128], index: 0, kind: input, shape index: {}]   ;;  %s286_s1 = inlined_call_operand.hbm [shape: f32[16,128], index: 1, kind: input, shape index: {}]   ;;  %s287_s2 = inlined_call_operand.hbm [shape: f32[32,128], index: 2, kind: output, shape index: {}]  }
   0x1   :  { %8 = vsyncpa [#allocation6], 0 }
   0x2   :  { %9 = vsyncpa [#allocation4], 0  ;;  %s18_s11 = sshll.u32 %s285_s0, 4  ;;  %s247_s12 = smov [#allocation2]   ;;  %s19_s11 = int_to_ptr.hbm [resolvable:$true] %s18_s11 }
   0x3   :  { %s20_s13 = sshll.u32 %s247_s12, 4  ;;  %s35_s16 = sshll.u32 %s286_s1, 4  ;;  %s21_s13 = int_to_ptr.vmem [resolvable:$true] %s20_s13  ;;  %s36_s16 = int_to_ptr.hbm [resolvable:$true] %s35_s16 }
   0x4   :  { %s248_s17 = smov 128   ;;  %s249_s18 = smov 8  }
   0x5   :  { %26 = dma.hbm_to_vmem [thread:$0]  %s19_s11, 256, %s21_s13, [#allocation3], %s248_s17, %s248_s17, %s249_s18  }
   0x6   :  { %s250_s19 = smov [#allocation5]  }
   0x7   :  { %s37_s20 = sshll.u32 %s250_s19, 4  ;;  %s38_s20 = int_to_ptr.vmem [resolvable:$true] %s37_s20 }
   0x8   :  { %43 = dma.hbm_to_vmem [thread:$0]  %s36_s16, 256, %s38_s20, [#allocation6], %s248_s17, %s248_s17, %s249_s18  }
   0x9   :  { %241 = dma.done.wait [#allocation3], 256  }
   0xa   :  { %242 = vsyncadd [#allocation3], 4294967040 }
   0xb   :  { %243 = dma.done.wait [#allocation6], 256  }
   0xc   :  { %244 = vsyncadd [#allocation6], 4294967040  ;;  %v69_v0 = vld [vmem:[#allocation2] sm:$0xff]  ;;  %v70_v1 = vld [vmem:[#allocation2 + $0x8] sm:$0xff]  ;;  %s251_s0 = smov [#allocation7]   ;;  %s137_s23 = sshll.u32 %s287_s2, 4  ;;  %s138_s23 = int_to_ptr.hbm [resolvable:$true] %s137_s23 }
   0xd   :  { %v73_v2 = vand.u32 2147483647, %v69_v0  ;;  %v74_v3 = vand.u32 2147483647, %v70_v1  ;;  %v71_v8 = vld [vmem:[#allocation5] sm:$0xff]  ;;  %v72_v9 = vld [vmem:[#allocation5 + $0x8] sm:$0xff] }
   0xe   :  { %v124_v10 = vadd.f32 %v72_v9, %v71_v8  ;;  %v81_v23 = vmax.f32 %v69_v0, 0.0  ;;  %v82_v26 = vmax.f32 %v70_v1, 0.0  ;;  %v109_v29 = vmul.f32 %v71_v8, %v69_v0  ;;  %s135_s1 = sshll.u32 %s251_s0, 4  ;;  %s136_s1 = int_to_ptr.vmem [resolvable:$true] %s135_s1 }
   0xf   :  { %v75_v4 = vsub.f32 0.0, %v73_v2  ;;  %v76_v5 = vsub.f32 0.0, %v74_v3  ;;  %v110_v31 = vmul.f32 %v72_v9, %v70_v1 }
  0x10   :  { %126 = vst [vmem:[#allocation7 + $0x10] sm:$0xff] %v124_v10 }
  0x11   :  { %v77_v6 = vmul.f32 1.442695, %v75_v4  ;;  %v79_v7 = vmul.f32 1.442695, %v76_v5 }
  0x13   :  { %157 = vpow2.f32 %v77_v6 }
  0x14   :  { %159 = vpow2.f32 %v79_v7 }
  0x19   :  { %v158_v11 = vpop.eup %157 }
  0x1a   :  { %v160_v12 = vpop.eup %159  ;;  %v83_v13 = vadd.f32 1.0, %v158_v11  ;;  %v86_v14 = vmul.f32 -0.5, %v158_v11  ;;  %v89_v18 = vand.u32 2147483647, %v158_v11 }
  0x1b   :  { %v92_v15 = vadd.f32 1.0, %v160_v12  ;;  %v95_v16 = vmul.f32 -0.5, %v160_v12  ;;  %v98_v20 = vand.u32 2147483647, %v160_v12 }
  0x1c   :  { %161 = vlog2.f32 %v83_v13  ;;  %v87_v17 = vadd.f32 1.0, %v86_v14  ;;  %vm90_vm0 = vcmp.lt.f32.partialorder %v89_v18, 0.0004427343 }
  0x1d   :  { %163 = vlog2.f32 %v92_v15  ;;  %v96_v19 = vadd.f32 1.0, %v95_v16  ;;  %vm99_vm1 = vcmp.lt.f32.partialorder %v98_v20, 0.0004427343 }
  0x1e   :  { %v88_v21 = vmul.f32 %v158_v11, %v87_v17 }
  0x1f   :  { %v97_v24 = vmul.f32 %v160_v12, %v96_v19 }
  0x22   :  { %v162_v22 = vpop.eup %161 }
  0x23   :  { %v164_v25 = vpop.eup %163  ;;  %v85_v27 = vmul.f32 0.6931472, %v162_v22 }
  0x24   :  { %v94_v28 = vmul.f32 0.6931472, %v164_v25 }
  0x25   :  { %v91_v30 = vsel %vm90_vm0, %v88_v21, %v85_v27 }
  0x26   :  { %v100_v32 = vsel %vm99_vm1, %v97_v24, %v94_v28  ;;  %v101_v33 = vadd.f32 %v91_v30, %v81_v23 }
  0x27   :  { %v102_v34 = vadd.f32 %v100_v32, %v82_v26 }
  0x28   :  { %v103_v35 = vsub.f32 %v69_v0, %v101_v33  ;;  %v111_v36 = vsub.f32 %v101_v33, %v109_v29 }
  0x29   :  { %v104_v37 = vsub.f32 %v70_v1, %v102_v34  ;;  %v112_v38 = vsub.f32 %v102_v34, %v110_v31 }
  0x2a   :  { %v105_v39 = vmul.f32 1.442695, %v103_v35 }
  0x2b   :  { %v107_v40 = vmul.f32 1.442695, %v104_v37  ;;  %v128_v41 = vadd.f32 %v112_v38, %v111_v36 }
  0x2c   :  { %165 = vpow2.f32 %v105_v39 }
  0x2d   :  { %167 = vpow2.f32 %v107_v40  ;;  %130 = vst [vmem:[#allocation7 + $0x18] sm:$0xff] %v128_v41 }
  0x32   :  { %v166_v42 = vpop.eup %165 }
  0x33   :  { %v168_v43 = vpop.eup %167  ;;  %v114_v44 = vmul.f32 %v166_v42, %v71_v8 }
  0x34   :  { %v115_v45 = vmul.f32 %v168_v43, %v72_v9  ;;  %v120_v46 = vadd.f32 %v168_v43, %v166_v42 }
  0x36   :  { %v116_v47 = vadd.f32 %v115_v45, %v114_v44  ;;  %122 = vst [vmem:[#allocation7 + $0x8] sm:$0xff] %v120_v46 }
  0x38   :  { %118 = vst [vmem:[#allocation7] sm:$0xff] %v116_v47 }
  0x39   :  { %143 = dma.vmem_to_hbm [thread:$0]  %s136_s1, 512, %s138_s23, [#allocation4], %s248_s17, %s248_s17, %s249_s18  }
  0x3a   :  { %245 = dma.done.wait [#allocation4], 512  }
  0x3b   :  { %246 = vsyncadd [#allocation4], 4294966784 }
  0x3c   :  { %148 = vsyncpa [#allocation3], 1 }
  0x3d   :  { %149 = vsyncpa [#allocation6], 1 }
  0x3e   :  { %150 = vsyncpa [#allocation4], 1 }

</bundles_post_ra>
